<compile_context>
chip_gen: v7x
topology: tpu7x:2x2x1
jax: 0.10.0
libtpu: 0.0.40
codegen_flags: <defaults>
</compile_context>

<pallas_src>
import functools

import jax
import jax.numpy as jnp
from jax.experimental import pallas as pl
from jax.experimental.pallas import tpu as pltpu


# Safe across generations: well above v5e's 16 MiB scoped-VMEM default, below
# v7x's 64 MiB physical VMEM (v5e/v6e have 128 MiB physical).
_VMEM_LIMIT_BYTES = 48 * 1024 * 1024
# Tile budget kept under the limit to leave headroom for pipeline bookkeeping.
_VMEM_TILE_BUDGET = 40 * 1024 * 1024


def _pos_emb_kernel(pos_ref, inv_ref, out_ref, *, half):
    # pos_ref: [tile_seq, 1] f32, inv_ref: [1, half] f32 (resident across grid),
    # out_ref: [tile_seq, 2*half] out_dtype.
    #
    # Outer product (torch.ger) via broadcasting for this tile.  A rank-1
    # jnp.dot on the MXU was considered (frees a VALU slot) but the win is a
    # few % at most; the broadcast multiply is the proven-safe lowering.
    s = pos_ref[...] * inv_ref[...]                      # [tile_seq, half] f32
    # Compute sin/cos in f32 (EUP/VALU); cast only at the store so a bf16
    # out_dtype halves writeback bytes without losing accuracy in the math.
    # When half % 128 == 0 both slab stores are lane-dense (unmasked vst).
    # TODO(synk): for half % 128 != 0 (e.g. Transformer-XL d_model=410) the cos
    # slab starts mid-vreg -> masked vst.msk; padding half to 128 would require
    # an extra HBM repack downstream, so it is intentionally not done here.
    out_ref[:, :half] = jnp.sin(s).astype(out_ref.dtype)
    out_ref[:, half:] = jnp.cos(s).astype(out_ref.dtype)


def _choose_tile_seq(seq, hidden_size, out_bytes, max_tile_seq=None):
    """Seq-tile rows sized purely by a VMEM byte budget (no fixed row cap)."""
    # Per live output row: 2x double-buffered output row (out_bytes wide) plus
    # ~1.5 f32-hidden-wide temporaries (s + sin/cos staging) inside the body.
    per_row_bytes = hidden_size * (2 * out_bytes + 6)
    rows = max(8, _VMEM_TILE_BUDGET // per_row_bytes)
    if max_tile_seq is not None:
        rows = min(rows, max_tile_seq)
    if rows >= seq:
        return seq                                       # single full tile
    return max(8, (rows // 8) * 8)                       # sublane-aligned


@functools.partial(
    jax.jit, static_argnames=("hidden_size", "bsz", "out_dtype", "max_tile_seq")
)
def positional_embedding(pos_seq, inv_freq, hidden_size, bsz=None,
                         out_dtype=jnp.float32, max_tile_seq=None):
    """pos_seq: [seq] float, inv_freq: [hidden_size//2] float.

    Returns [1, seq, hidden_size] (or [bsz, seq, hidden_size] if bsz given),
    matching the PyTorch module's forward semantics.  `out_dtype` defaults to
    f32 (module semantics); pass bf16 to halve writeback for bf16 consumers.
    `max_tile_seq` is a testing/tuning override for the VMEM-budgeted tile.
    """
    assert hidden_size % 2 == 0, "hidden_size must be even"
    seq = pos_seq.shape[0]
    half = hidden_size // 2

    pos_2d = pos_seq.reshape(seq, 1).astype(jnp.float32)
    inv_2d = inv_freq.reshape(1, half).astype(jnp.float32)

    out_bytes = jnp.dtype(out_dtype).itemsize
    tile_seq = _choose_tile_seq(seq, hidden_size, out_bytes, max_tile_seq)
    grid = (pl.cdiv(seq, tile_seq),)

    pos_emb = pl.pallas_call(
        functools.partial(_pos_emb_kernel, half=half),
        out_shape=jax.ShapeDtypeStruct((seq, hidden_size), out_dtype),
        grid_spec=pltpu.PrefetchScalarGridSpec(
            num_scalar_prefetch=0,
            grid=grid,
            in_specs=[
                pl.BlockSpec((tile_seq, 1), lambda i: (i, 0)),   # pos tile
                pl.BlockSpec((1, half), lambda i: (0, 0)),       # inv_freq resident
            ],
            out_specs=pl.BlockSpec((tile_seq, hidden_size), lambda i: (i, 0)),
        ),
        compiler_params=pltpu.CompilerParams(
            # TODO(synk): on v7x, use pltpu.CORE_PARALLEL (or an explicit
            # core_map split) on the seq axis to engage the second TensorCore;
            # plain "parallel" is kept here because it is safe on every chip.
            dimension_semantics=("parallel",),
            vmem_limit_bytes=_VMEM_LIMIT_BYTES,
        ),
    )(pos_2d, inv_2d)

    pos_emb = pos_emb[None, :, :]                         # [1, seq, hidden]
    if bsz is not None:
        # torch.expand is a view; broadcast_to only materializes bsz copies of
        # [seq, hidden] in HBM if the consumer forces it — downstream ops
        # should fuse this broadcast for free.
        pos_emb = jnp.broadcast_to(pos_emb, (bsz, seq, hidden_size))
    return pos_emb


def make_inv_freq(hidden_size):
    # Deterministic buffer exactly as in the module __init__:
    # inv_freq = 1 / 10000 ** (arange(0, hidden, 2) / hidden)
    return 1.0 / (10000.0 ** (jnp.arange(0.0, hidden_size, 2.0) / hidden_size))


def _reference(pos_seq, inv_freq, bsz, hidden_size):
    sinusoid = jnp.outer(pos_seq, inv_freq)
    ref = jnp.concatenate([jnp.sin(sinusoid), jnp.cos(sinusoid)], axis=-1)
    ref = ref[None, :, :]
    if bsz is not None:
        ref = jnp.broadcast_to(ref, (bsz, pos_seq.shape[0], hidden_size))
    return ref


if __name__ == "__main__":
    key = jax.random.PRNGKey(0)

    # --- small primary test (module-scale shapes), f32 output ---
    hidden_size = 32
    seq_len = 8
    bsz = 2
    pos_seq = jax.random.uniform(key, (seq_len,), dtype=jnp.float32) * 10.0
    inv_freq = make_inv_freq(hidden_size)

    out = positional_embedding(pos_seq, inv_freq, hidden_size, bsz=bsz)
    out = jax.block_until_ready(out)
    ref = _reference(pos_seq, inv_freq, bsz, hidden_size)
    assert out.shape == (bsz, seq_len, hidden_size)
    assert out.dtype == jnp.float32
    assert jnp.allclose(out, ref, atol=1e-5), "mismatch vs reference (f32 small)"

    # --- bf16 output path (writeback-halving variant) ---
    out_bf16 = positional_embedding(pos_seq, inv_freq, hidden_size, bsz=None,
                                    out_dtype=jnp.bfloat16)
    out_bf16 = jax.block_until_ready(out_bf16)
    ref_nb = _reference(pos_seq, inv_freq, None, hidden_size)
    assert out_bf16.shape == (1, seq_len, hidden_size)
    assert out_bf16.dtype == jnp.bfloat16
    assert jnp.allclose(out_bf16.astype(jnp.float32), ref_nb, atol=2e-2), \
        "mismatch vs reference (bf16)"

    # --- tiled path: multiple grid steps + partial last seq tile ---
    hidden_size2 = 256
    seq_len2 = 1000                       # with max_tile_seq=512 -> grid=(2,), last tile partial
    pos_seq2 = jnp.arange(seq_len2, dtype=jnp.float32)
    inv_freq2 = make_inv_freq(hidden_size2)
    out2 = positional_embedding(pos_seq2, inv_freq2, hidden_size2, bsz=None,
                                max_tile_seq=512)
    out2 = jax.block_until_ready(out2)
    ref2 = _reference(pos_seq2, inv_freq2, None, hidden_size2)
    assert out2.shape == (1, seq_len2, hidden_size2)
    assert jnp.allclose(out2, ref2, atol=1e-5), "mismatch vs reference (tiled)"

    print("KERNEL_OK")
</pallas_src>

<mosaic_0001>
module attributes {stable_mosaic.version = 11 : i64} {
  func.func @_pos_emb_kernel(%arg0: i32, %arg1: memref<8x1xf32, #tpu.memory_space<vmem>>, %arg2: memref<1x16xf32, #tpu.memory_space<vmem>>, %arg3: memref<8x32xf32, #tpu.memory_space<vmem>>) attributes {dimension_semantics = [#tpu.dimension_semantics<parallel>], iteration_bounds = array<i64: 1>, scalar_prefetch = 0 : i64, scratch_operands = 0 : i64, tpu.core_type = #tpu.core_type<tc>, window_params = [{transform_indices = @transform_0, window_bounds = array<i64: 8, 1>}, {pipeline_mode = #tpu.pipeline_mode<synchronous>, transform_indices = @transform_1, window_bounds = array<i64: 1, 16>}, {transform_indices = @transform_2, window_bounds = array<i64: 8, 32>}]} {
    %c0 = arith.constant 0 : index
    %c0_0 = arith.constant 0 : index
    %0 = vector.load %arg1[%c0, %c0_0] : memref<8x1xf32, #tpu.memory_space<vmem>>, vector<8x1xf32>
    %c0_1 = arith.constant 0 : index
    %c0_2 = arith.constant 0 : index
    %1 = vector.load %arg2[%c0_1, %c0_2] : memref<1x16xf32, #tpu.memory_space<vmem>>, vector<1x16xf32>
    %2 = vector.broadcast %0 : vector<8x1xf32> to vector<8x16xf32>
    %3 = vector.broadcast %1 : vector<1x16xf32> to vector<8x16xf32>
    %4 = arith.mulf %2, %3 : vector<8x16xf32>
    %5 = math.sin %4 : vector<8x16xf32>
    %c0_3 = arith.constant 0 : index
    %c0_4 = arith.constant 0 : index
    %6 = vector.load %arg3[%c0_3, %c0_4] : memref<8x32xf32, #tpu.memory_space<vmem>>, vector<8x16xf32>
    tpu.vector_store %arg3[%c0_3, %c0_4], %5 {strides = array<i32>} : memref<8x32xf32, #tpu.memory_space<vmem>>, vector<8x16xf32>,
    %7 = math.cos %4 : vector<8x16xf32>
    %c0_5 = arith.constant 0 : index
    %c16 = arith.constant 16 : index
    %8 = vector.load %arg3[%c0_5, %c16] : memref<8x32xf32, #tpu.memory_space<vmem>>, vector<8x16xf32>
    tpu.vector_store %arg3[%c0_5, %c16], %7 {strides = array<i32>} : memref<8x32xf32, #tpu.memory_space<vmem>>, vector<8x16xf32>,
    return
  }
  func.func @transform_0(%arg0: i32) -> (i32, i32) {
    %c0_i32 = arith.constant 0 : i32
    %c0_i32_0 = arith.constant 0 : i32
    return %arg0, %c0_i32 : i32, i32
  }
  func.func @transform_1(%arg0: i32) -> (i32, i32) {
    %c0_i32 = arith.constant 0 : i32
    %c0_i32_0 = arith.constant 0 : i32
    %c0_i32_1 = arith.constant 0 : i32
    return %c0_i32, %c0_i32_0 : i32, i32
  }
  func.func @transform_2(%arg0: i32) -> (i32, i32) {
    %c0_i32 = arith.constant 0 : i32
    %c0_i32_0 = arith.constant 0 : i32
    return %arg0, %c0_i32 : i32, i32
  }
}

</mosaic_0001>

<bundles_post_ra>
// kernel: positional_embedding.1
= control target key start
LH: loop header
LB: loop body
LE: loop exit
PB: predicated region body
PF: predicated region fallthrough
CT: control target
= control target key end

     0   :  { %v270_v0 = vmov 0   ;;  %v271_v15 = vmov 683565275   ;;  %v272_v17 = vmov 2475754826   ;;  %vm129_vm10 = vcmask 130048   ;;  %s327_s0 = inlined_call_operand.vmem [shape: f32[8,1], index: 0, kind: input, shape index: {}]   ;;  %s328_s1 = inlined_call_operand.vmem [shape: f32[1,16], index: 1, kind: input, shape index: {}]   ;;  %s329_s2 = inlined_call_operand.vmem [shape: f32[8,32], index: 2, kind: output, shape index: {}]  }
   0x1   :  { %265 = vset.pattern.permute.xlu0 %v270_v0  ;;  %v11_v1 = vld [vmem:[%s327_s0] sm:$0xff]  ;;  %v273_v20 = vmov 2131351028   ;;  %v274_v23 = vmov 2102212464   ;;  %s277_s0 = smov 16  }
   0x2   :  { %15 = vperm.xlu0 %265, %v11_v1   ;;  %v244_v2 = vld [vmem:[%s328_s1] ss:$0 sm:$0xff]  ;;  %v275_v26 = vmov 920167782   ;;  %v276_v29 = vmov 1326507024  }
  0x81   :  { %v16_v3 = vpop.permute.xlu0 %15 }
  0x82   :  { %v299_v4 = vmul.f32 %v244_v2, %v16_v3 }
  0x84   :  { %v28_v5 = vand.u32 2139095040, %v299_v4  ;;  %v25_v9 = vand.u32 2147483647, %v299_v4  ;;  %vm27_vm7 = vcmp.lt.s32.totalorder %v299_v4, 0 }
  0x86   :  { %v29_v6 = vshrl.u32 %v28_v5, 23  ;;  %v32_v12 = vand.u32 8388607, %v25_v9  ;;  %vm26_vm8 = vcmp.le.f32.partialorder %v25_v9, 0.7853982 }
  0x88   :  { %v245_v7 = vadd.s32 4294967169, %v29_v6  ;;  %v33_v31 = vor.u32 8388608, %v32_v12 }
  0x8a   :  { %v35_v8 = vadd.s32 1, %v245_v7  ;;  %v73_v45 = vshll.u32 %v33_v31, 8 }
  0x8c   :  { %vm36_vm0 = vcmp.gt.s32.totalorder %v35_v8, 0 }
  0x8d   :  { %v37_v10 = vsel %vm36_vm0, %v35_v8, 0  ;;  %vm117_vm0 = vweird.f32 %v299_v4 }
  0x8e   :  { %v39_v11 = vand.u32 31, %v37_v10  ;;  %v38_v14 = vshrl.u32 %v37_v10, 5 }
  0x90   :  { %v40_v13 = vsub.s32 32, %v39_v11  ;;  %v42_v16 = vshll.u32 %v271_v15, %v39_v11  ;;  %v45_v18 = vshll.u32 %v272_v17, %v39_v11  ;;  %v48_v22 = vshll.u32 %v273_v20, %v39_v11 }
  0x91   :  { %v51_v25 = vshll.u32 %v274_v23, %v39_v11  ;;  %v54_v28 = vshll.u32 %v275_v26, %v39_v11  ;;  %vm57_vm1 = vcmp.lt.s32.totalorder %v38_v14, 1  ;;  %vm60_vm2 = vcmp.lt.s32.totalorder %v38_v14, 4 }
  0x92   :  { %v43_v19 = vshrl.u32 %v272_v17, %v40_v13  ;;  %v46_v21 = vshrl.u32 %v273_v20, %v40_v13  ;;  %v49_v24 = vshrl.u32 %v274_v23, %v40_v13  ;;  %v52_v27 = vshrl.u32 %v275_v26, %v40_v13 }
  0x93   :  { %v55_v30 = vshrl.u32 %v276_v29, %v40_v13  ;;  %v41_v40 = vshrl.u32 %v271_v15, %v40_v13  ;;  %vm59_vm3 = vcmp.lt.s32.totalorder %v38_v14, 3  ;;  %vm58_vm4 = vcmp.lt.s32.totalorder %v38_v14, 2 }
  0x94   :  { %v44_v32 = vor.u32 %v43_v19, %v42_v16  ;;  %v47_v33 = vor.u32 %v46_v21, %v45_v18  ;;  %v50_v34 = vor.u32 %v49_v24, %v48_v22  ;;  %v53_v35 = vor.u32 %v52_v27, %v51_v25 }
  0x95   :  { %v56_v36 = vor.u32 %v55_v30, %v54_v28 }
  0x96   :  { %v62_v37 = vsel %vm60_vm2, %v50_v34, 2102212464  ;;  %v65_v38 = vsel %vm57_vm1, %v44_v32, %v47_v33  ;;  %v69_v39 = vsel %vm57_vm1, %v47_v33, %v50_v34  ;;  %v66_v41 = vsel %vm60_vm2, %v53_v35, 920167782 }
  0x97   :  { %v70_v42 = vsel %vm60_vm2, %v56_v36, 1326507024  ;;  %v67_v43 = vsel %vm59_vm3, %v50_v34, %v66_v41  ;;  %v61_v46 = vsel %vm57_vm1, %v41_v40, %v44_v32  ;;  %v63_v47 = vsel %vm59_vm3, %v47_v33, %v62_v37 }
  0x98   :  { %v71_v44 = vsel %vm59_vm3, %v53_v35, %v70_v42  ;;  %v68_v48 = vsel %vm58_vm4, %v65_v38, %v67_v43  ;;  %v64_v54 = vsel %vm58_vm4, %v61_v46, %v63_v47  ;;  %vm238_vm1 = vcmask 261248  }
  0x99   :  { %v72_v49 = vsel %vm58_vm4, %v69_v39, %v71_v44  ;;  %v308_v52 = vmul.u32.u64.low %v73_v45, %v68_v48  ;;  %v309_v53 = vmul.u32.u64.high %v73_v45, %v68_v48, %v308_v52  ;;  %v80_v56 = vmul.u32 %v73_v45, %v64_v54 }
  0x9a   :  { %v305_v50 = vmul.u32.u64.low %v73_v45, %v72_v49  ;;  %v306_v51 = vmul.u32.u64.high %v73_v45, %v72_v49, %v305_v50 }
  0x9b   :  { %v83_v55 = vadd.s32 1, %v309_v53 }
  0x9c   :  { %vm82_vm5 = vc.u32 %v306_v51, %v308_v52  ;;  %v81_v5 = vadd.s32 %v308_v52, %v306_v51 }
  0x9d   :  { %v84_v57 = vsel %vm82_vm5, %v83_v55, %v309_v53 }
  0x9e   :  { %v85_v58 = vadd.s32 %v84_v57, %v80_v56 }
  0xa0   :  { %v86_v59 = vadd.s32 536870912, %v85_v58 }
  0xa2   :  { %v87_v60 = vshrl.u32 %v86_v59, 30 }
  0xa4   :  { %v88_v61 = vshll.u32 %v87_v60, 30  ;;  %v111_v18 = vsub.s32 4, %v87_v60 }
  0xa6   :  { %v89_v62 = vsub.s32 %v85_v58, %v88_v61  ;;  %v112_v21 = vsel %vm27_vm7, %v111_v18, %v87_v60 }
  0xa7   :  { %v114_v23 = vsel %vm26_vm8, 0, %v112_v21 }
  0xa8   :  { %v91_v63 = vsub.s32 0, %v89_v62  ;;  %v118_v24 = vadd.s32 3, %v114_v23  ;;  %v224_v26 = vand.u32 3, %v114_v23 }
  0xaa   :  { %v246_v0 = vmin.u32 %v91_v63, %v89_v62  ;;  %v119_v25 = vand.u32 3, %v118_v24  ;;  %vm229_vm11 = vcmp.eq.s32.totalorder %v224_v26, 2  ;;  %vm226_vm13 = vcmp.eq.s32.totalorder %v224_v26, 0 }
  0xab   :  { %vm225_vm15 = vcmp.lt.s32.totalorder %v224_v26, 2 }
  0xac   :  { %v93_v1 = vclz %v246_v0  ;;  %vm124_vm9 = vcmp.eq.s32.totalorder %v119_v25, 2  ;;  %vm121_vm12 = vcmp.eq.s32.totalorder %v119_v25, 0  ;;  %vm120_vm14 = vcmp.lt.s32.totalorder %v119_v25, 2 }
  0xae   :  { %v247_v2 = vadd.s32 4294967294, %v93_v1 }
  0xb0   :  { %vm248_vm6 = vcmp.lt.s32.totalorder %v247_v2, 0 }
  0xb1   :  { %v96_v3 = vsel %vm248_vm6, 0, %v247_v2 }
  0xb2   :  { %v97_v6 = vsub.s32 32, %v96_v3  ;;  %v101_v7 = vsub.s32 4294967266, %v96_v3  ;;  %v98_v8 = vshll.u32 %v89_v62, %v96_v3 }
  0xb4   :  { %v99_v10 = vshrl.u32 %v81_v5, %v97_v6  ;;  %v102_v11 = vadd.s32 127, %v101_v7 }
  0xb6   :  { %v100_v12 = vor.u32 %v99_v10, %v98_v8  ;;  %v103_v13 = vshll.u32 %v102_v11, 23 }
  0xb8   :  { %v104_v14 = vor.u32 4788187, %v103_v13  ;;  %v107_v16 = vcvt.s32.f32 %v100_v12 }
  0xba   :  { %v105_v15 = vand.u32 2147483647, %v104_v14 }
  0xbc   :  { %v108_v17 = vmul.f32 %v107_v16, %v105_v15 }
  0xbe   :  { %v109_v19 = vxor.u32 2147483648, %v108_v17 }
  0xc0   :  { %v110_v20 = vsel %vm27_vm7, %v109_v19, %v108_v17 }
  0xc1   :  { %v113_v22 = vsel %vm26_vm8, %v299_v4, %v110_v20 }
  0xc2   :  { %266 = vcosq.f32 %v113_v22 }
  0xc3   :  { %268 = vsinq.f32 %v113_v22 }
  0xcc   :  { %v267_v27 = vpop.eup %266 }
  0xcd   :  { %v269_v28 = vpop.eup %268  ;;  %v125_v29 = vxor.u32 2147483648, %v267_v27 }
  0xce   :  { %v122_v30 = vxor.u32 2147483648, %v269_v28 }
  0xcf   :  { %v231_v31 = vsel %vm229_vm11, %v125_v29, %v269_v28  ;;  %v126_v9 = vsel %vm124_vm9, %v125_v29, %v269_v28 }
  0xd0   :  { %v228_v32 = vsel %vm226_vm13, %v267_v27, %v122_v30  ;;  %v123_v33 = vsel %vm121_vm12, %v267_v27, %v122_v30 }
  0xd1   :  { %v232_v34 = vsel %vm225_vm15, %v228_v32, %v231_v31  ;;  %v127_v35 = vsel %vm120_vm14, %v123_v33, %v126_v9 }
  0xd2   :  { %v233_v36 = vsel %vm117_vm0, nan, %v232_v34  ;;  %v128_v37 = vsel %vm117_vm0, nan, %v127_v35 }
  0xd3   :  { %235 = vrot.lane.b32.xlu0 %v233_v36, %s277_s0  ;;  %130 = vst.msk [vmem:[%s329_s2] sm:$0xff] %vm129_vm10, %v128_v37 }
 0x145   :  { %v236_v38 = vpop.permute.xlu0 %235 }
 0x146   :  { %239 = vst.msk [vmem:[%s329_s2] sm:$0xff] %vm238_vm1, %v236_v38 }

</bundles_post_ra>
